<compile_context>
chip_gen: v7x
topology: tpu7x:2x2x1
jax: 0.10.0
libtpu: 0.0.40
codegen_flags: <defaults>
</compile_context>

<pallas_src>
import math

import jax
import jax.numpy as jnp
from jax.experimental import pallas as pl
from jax.experimental.pallas import tpu as pltpu

_LANE = 128


def _cdiv(a, b):
    return (a + b - 1) // b


def _round_up(x, m):
    return ((x + m - 1) // m) * m


def poly_kernel(p_ref, x_ref, o_ref):
    # p_ref: SMEM f32[4] = (w0, w1, w2, bias); x_ref / o_ref: VMEM row-tiles.
    w0 = p_ref[0]
    w1 = p_ref[1]
    w2 = p_ref[2]
    b = p_ref[3]
    x = x_ref[...].astype(jnp.float32)
    # Horner: w0*x + w1*x^2 + w2*x^3 + b == ((w2*x + w1)*x + w0)*x + b
    y = ((w2 * x + w1) * x + w0) * x + b
    o_ref[...] = y.astype(o_ref.dtype)


def polynomial_forward(x, params, *, target_tile_bytes=2 * 1024 * 1024):
    """y = w0*x + w1*x^2 + w2*x^3 + bias, elementwise. Any shape, f32/bf16."""
    orig_shape = x.shape
    dtype = x.dtype
    itemsize = jnp.dtype(dtype).itemsize
    min_sub = {4: 8, 2: 16, 1: 32}.get(itemsize, 8)   # dtype-aware sublane tile
    params = params.astype(jnp.float32)

    # ---- Wrapper-side layout: lane-dense 2-D slab (reshape is ~free in XLA).
    total = math.prod(orig_shape) if orig_shape else 1
    flat = x.reshape(total)
    pad = (-total) % _LANE
    if pad:
        flat = jnp.pad(flat, (0, pad))
    padded_total = total + pad

    # Lane width: largest "nice" multiple of 128 dividing the flat size.
    lane = _LANE
    for cand in (1024, 512, 256, 128):
        if padded_total % cand == 0:
            lane = cand
            break
    rows = padded_total // lane
    x2 = flat.reshape(rows, lane)

    # ---- Row tiling: ~2 MiB tiles, full lane width, dtype-aware rounding.
    if rows <= min_sub:
        tm = rows                                        # full-extent block (always legal)
    else:
        tm = max(min_sub, target_tile_bytes // (lane * itemsize))
        tm = min(_round_up(tm, min_sub), _round_up(rows, min_sub))
        # Guarantee >=2 parallel grid steps when possible (feeds both v7x TCs).
        if _cdiv(rows, tm) < 2:
            tm = _round_up(_cdiv(rows, 2), min_sub)

    grid = (_cdiv(rows, tm),)

    cost = pl.CostEstimate(
        flops=6 * padded_total,
        transcendentals=0,
        bytes_accessed=2 * padded_total * itemsize + 4 * 4,
    )

    out2 = pl.pallas_call(
        poly_kernel,
        out_shape=jax.ShapeDtypeStruct((rows, lane), dtype),
        grid_spec=pltpu.PrefetchScalarGridSpec(
            num_scalar_prefetch=0,
            grid=grid,
            in_specs=[
                pl.BlockSpec(memory_space=pltpu.SMEM),        # scalar params
                pl.BlockSpec((tm, lane), lambda i: (i, 0)),   # full-width row tile
            ],
            out_specs=pl.BlockSpec((tm, lane), lambda i: (i, 0)),
        ),
        compiler_params=pltpu.CompilerParams(
            dimension_semantics=("parallel",),
        ),
        cost_estimate=cost,
    )(params, x2)

    out_flat = out2.reshape(padded_total)
    if pad:
        out_flat = out_flat[:total]
    return out_flat.reshape(orig_shape)


def _reference(x, params):
    p = params.astype(jnp.float32)
    xf = x.astype(jnp.float32)
    y = p[0] * xf + p[1] * jnp.power(xf, 2) + p[2] * jnp.power(xf, 3) + p[3]
    return y.astype(x.dtype)


if __name__ == "__main__":
    key = jax.random.PRNGKey(0)
    kp, k1, k2, k3, k4 = jax.random.split(key, 5)

    # Deterministic "randn(1)" params: (weight0, weight1, weight2, bias).
    params = jax.random.normal(kp, (4,), dtype=jnp.float32)

    fwd = jax.jit(polynomial_forward)

    # 1) 1-D "dataset" vector, size a multiple of 128 (typical poly-fit data).
    x1 = jax.random.normal(k1, (256,), dtype=jnp.float32)
    o1 = jax.block_until_ready(fwd(x1, params))
    assert jnp.allclose(o1, _reference(x1, params), atol=1e-5, rtol=1e-5), \
        "mismatch vs reference (1-D aligned)"

    # 2) (N, 1) column vector, ragged total (exercises pad + slice-back path).
    x2 = jax.random.normal(k2, (100, 1), dtype=jnp.float32)
    o2 = jax.block_until_ready(fwd(x2, params))
    assert jnp.allclose(o2, _reference(x2, params), atol=1e-5, rtol=1e-5), \
        "mismatch vs reference (column vector)"

    # 3) Ragged 2-D input (multi-step grid + masked edge tile).
    x3 = jax.random.normal(k3, (20, 160), dtype=jnp.float32)
    o3 = jax.block_until_ready(fwd(x3, params))
    assert jnp.allclose(o3, _reference(x3, params), atol=1e-5, rtol=1e-5), \
        "mismatch vs reference (ragged 2-D)"

    # 4) bf16 input (half the HBM traffic; f32 compute, explicit downcast store).
    x4 = jax.random.normal(k4, (64, 512), dtype=jnp.bfloat16)
    o4 = jax.block_until_ready(fwd(x4, params))
    assert jnp.allclose(o4.astype(jnp.float32),
                        _reference(x4, params).astype(jnp.float32),
                        atol=5e-2, rtol=5e-2), \
        "mismatch vs reference (bf16)"

    print("KERNEL_OK")
</pallas_src>

<mosaic_0001>
module attributes {stable_mosaic.version = 11 : i64} {
  func.func @poly_kernel(%arg0: i32, %arg1: memref<4xf32, #tpu.memory_space<smem>>, %arg2: memref<1x256xf32, #tpu.memory_space<vmem>>, %arg3: memref<1x256xf32, #tpu.memory_space<vmem>>) attributes {dimension_semantics = [#tpu.dimension_semantics<parallel>], iteration_bounds = array<i64: 1>, scalar_prefetch = 0 : i64, scratch_operands = 0 : i64, tpu.core_type = #tpu.core_type<tc>, window_params = [{transform_indices = @transform_0, window_bounds = array<i64: 4>}, {transform_indices = @transform_1, window_bounds = array<i64: 1, 256>}, {transform_indices = @transform_2, window_bounds = array<i64: 1, 256>}]} {
    %c0 = arith.constant 0 : index
    %0 = memref.load %arg1[%c0] : memref<4xf32, #tpu.memory_space<smem>>
    %c1 = arith.constant 1 : index
    %1 = memref.load %arg1[%c1] : memref<4xf32, #tpu.memory_space<smem>>
    %c2 = arith.constant 2 : index
    %2 = memref.load %arg1[%c2] : memref<4xf32, #tpu.memory_space<smem>>
    %c3 = arith.constant 3 : index
    %3 = memref.load %arg1[%c3] : memref<4xf32, #tpu.memory_space<smem>>
    %c0_0 = arith.constant 0 : index
    %c0_1 = arith.constant 0 : index
    %4 = vector.load %arg2[%c0_0, %c0_1] : memref<1x256xf32, #tpu.memory_space<vmem>>, vector<1x256xf32>
    %5 = vector.broadcast %2 : f32 to vector<1x256xf32>
    %6 = arith.mulf %5, %4 : vector<1x256xf32>
    %7 = vector.broadcast %1 : f32 to vector<1x256xf32>
    %8 = arith.addf %6, %7 : vector<1x256xf32>
    %9 = arith.mulf %8, %4 : vector<1x256xf32>
    %10 = vector.broadcast %0 : f32 to vector<1x256xf32>
    %11 = arith.addf %9, %10 : vector<1x256xf32>
    %12 = arith.mulf %11, %4 : vector<1x256xf32>
    %13 = vector.broadcast %3 : f32 to vector<1x256xf32>
    %14 = arith.addf %12, %13 : vector<1x256xf32>
    %c0_2 = arith.constant 0 : index
    %c0_3 = arith.constant 0 : index
    %15 = vector.load %arg3[%c0_2, %c0_3] : memref<1x256xf32, #tpu.memory_space<vmem>>, vector<1x256xf32>
    tpu.vector_store %arg3[%c0_2, %c0_3], %14 {strides = array<i32>} : memref<1x256xf32, #tpu.memory_space<vmem>>, vector<1x256xf32>,
    return
  }
  func.func @transform_0(%arg0: i32) -> i32 {
    %c0_i32 = arith.constant 0 : i32
    %c0_i32_0 = arith.constant 0 : i32
    return %c0_i32 : i32
  }
  func.func @transform_1(%arg0: i32) -> (i32, i32) {
    %c0_i32 = arith.constant 0 : i32
    %c0_i32_0 = arith.constant 0 : i32
    return %arg0, %c0_i32 : i32, i32
  }
  func.func @transform_2(%arg0: i32) -> (i32, i32) {
    %c0_i32 = arith.constant 0 : i32
    %c0_i32_0 = arith.constant 0 : i32
    return %arg0, %c0_i32 : i32, i32
  }
}

</mosaic_0001>

<bundles_post_ra>
// kernel: polynomial_forward.1
= control target key start
LH: loop header
LB: loop body
LE: loop exit
PB: predicated region body
PF: predicated region fallthrough
CT: control target
= control target key end

     0   :  { %7 = vsyncpa [#allocation4], 0  ;;  %s138_s0 = inlined_call_operand.vmem [shape: f32[4], index: 0, kind: input, shape index: {}]   ;;  %s139_s1 = inlined_call_operand.vmem [shape: f32[1,256], index: 1, kind: input, shape index: {}]   ;;  %s140_s2 = inlined_call_operand.hbm [shape: f32[1,256], index: 2, kind: output, shape index: {}]  }
   0x1   :  { %8 = vsyncpa [#allocation3], 0  ;;  %s15_s11 = sshll.u32 %s138_s0, 4  ;;  %s16_s11 = int_to_ptr.vmem [resolvable:$true] %s15_s11 }
   0x2   :  { %s65_s12 = scalar_lea.vmem %s16_s11, 16  ;;  %p70_p1 = scmp.lt.s32.totalorder %s16_s11, %s16_s11 }
   0x3   :  { %p66_p0 = scmp.ne.s32.totalorder %s16_s11, %s65_s12  ;;  %p71_p2 = scmp.lt.s32.totalorder %s65_s12, %s65_s12 }
   0x5   :  { %p72_p3 = por %p71_p2, %p70_p1 }
   0x7   :  { %p73_p4 = pnand %p72_p3, %p66_p0 }
   0x9   :  { %76 = shalt.err (!%p73_p4)
}
   0xa   :  { %s103_s13 = smov [#allocation2]  }
   0xb   :  { %18 = dma.vmem_to_smem %s16_s11, 16, %s103_s13, [#allocation4]  }
   0xc   :  { %99 = dma.done.wait [#allocation4], 16  }
   0xd   :  { %100 = vsyncadd [#allocation4], 4294967280 }
   0xe   :  { %24 = sfence }
   0xf   :  { %s60_s14 = sld [smem:[#allocation2 + $0x1]]  ;;  %s61_s15 = sld [smem:[#allocation2 + $0x2]]  ;;  %v29_v0 = vld [vmem:[%s139_s1] sm:$0x3]  ;;  %v40_v7 = vlaneseq }
  0x10   :  { %s25_s16 = sld [smem:[#allocation2]]  ;;  %s62_s0 = sld [smem:[#allocation2 + $0x3]] }
  0x11   :  { %s104_s19 = smov [#allocation5]   ;;  %vm42_vm0 = vcmp.lt.s32.totalorder %v40_v7, 256 }
  0x12   :  { %s51_s20 = sshll.u32 %s104_s19, 4  ;;  %s52_s20 = int_to_ptr.vmem [resolvable:$true] %s51_s20 }
  0x13   :  { %s77_s21 = scalar_lea.vmem %s52_s20, 32  ;;  %p82_p6 = scmp.lt.s32.totalorder %s52_s20, %s52_s20 }
  0x14   :  { %p78_p5 = scmp.ne.s32.totalorder %s52_s20, %s77_s21  ;;  %p83_p7 = scmp.lt.s32.totalorder %s77_s21, %s77_s21 }
  0x15   :  { %v30_v1 = vstv %s61_s15  ;;  %v32_v2 = vstv %s60_s14 }
  0x16   :  { %v31_v3 = vmul.f32 %v30_v1, %v29_v0  ;;  %v35_v5 = vstv %s25_s16  ;;  %v38_v9 = vstv %s62_s0  ;;  %p84_p8 = por %p83_p7, %p82_p6 }
  0x18   :  { %v33_v4 = vadd.f32 %v32_v2, %v31_v3  ;;  %p85_p9 = pnand %p84_p8, %p78_p5 }
  0x1a   :  { %v34_v6 = vmul.f32 %v33_v4, %v29_v0 }
  0x1c   :  { %v36_v8 = vadd.f32 %v35_v5, %v34_v6 }
  0x1e   :  { %v37_v10 = vmul.f32 %v36_v8, %v29_v0 }
  0x20   :  { %v39_v11 = vadd.f32 %v38_v9, %v37_v10 }
  0x22   :  { %44 = vst.msk [vmem:[#allocation5] sm:$0x3] %vm42_vm0, %v39_v11 }
  0x23   :  { %88 = shalt.err (!%p85_p9)
}
  0x24   :  { %s89_s23 = scalar_lea.hbm %s140_s2, 32 }
  0x25   :  { %p90_p10 = scmp.ne.s32.totalorder %s140_s2, %s89_s23  ;;  %p93_p11 = scmp.lt.u32.totalorder %s89_s23, %s140_s2 }
  0x27   :  { %p95_p12 = pnand %p93_p11, %p90_p10 }
  0x29   :  { %98 = shalt.err (!%p95_p12)
}
  0x2a   :  { %54 = dma.vmem_to_hbm [thread:$0]  %s52_s20, 32, %s140_s2, [#allocation3]  }
  0x2b   :  { %101 = dma.done.wait [#allocation3], 32  }
  0x2c   :  { %102 = vsyncadd [#allocation3], 4294967264 }
  0x2d   :  { %58 = vsyncpa [#allocation3], 1 }
  0x2e   :  { %59 = vsyncpa [#allocation4], 1 }

</bundles_post_ra>
